<compile_context>
chip_gen: v7x
topology: tpu7x:2x2x1
jax: 0.10.0
libtpu: 0.0.40
codegen_flags: <defaults>
</compile_context>

<pallas_src>
import functools

import jax
import jax.numpy as jnp
from jax.experimental import pallas as pl
from jax.experimental.pallas import tpu as pltpu


def _round_up(n, m):
    return ((n + m - 1) // m) * m


def _cnn_kernel(x_ref, w_ref, b_ref, o_ref, *, kernel, l_out):
    """Conv1d (tap-accumulate) + max-over-time + bias + ReLU.

    x_ref: (TB, L, Cin)          input tile, NLC layout, compute dtype
    w_ref: (K, Cin, Cout_pad)    conv weight, compute dtype, lane-padded Cout
    b_ref: (1, Cout_pad)         conv bias (f32, lane-padded)
    o_ref: (TB, Cout_pad)        output tile
    """
    x = x_ref[...]                                  # (TB, L, Cin)

    # Accumulate the K conv taps with K small matmuls (contraction over Cin,
    # the lane axis).  Static sublane-offset slices only -- no lane-misaligned
    # concat, no im2col slab stored to / re-read from VMEM.
    acc = None
    for dk in range(kernel):
        xt = x[:, dk:dk + l_out, :]                 # (TB, L_out, Cin)
        part = jax.lax.dot_general(
            xt, w_ref[dk],
            dimension_numbers=(((2,), (0,)), ((), ())),
            preferred_element_type=jnp.float32,
        )                                           # (TB, L_out, Cout_pad) f32
        acc = part if acc is None else acc + part

    # Max over time FIRST.  Exact only because the bias is time-invariant and
    # ReLU is monotone -- do not move a position-dependent bias here.
    m = jnp.max(acc, axis=1)                        # (TB, Cout_pad)
    o_ref[...] = jnp.maximum(m + b_ref[...], 0.0).astype(o_ref.dtype)


def cnn_forward_nlc(x_nlc, weight, bias, *, kernel,
                    compute_dtype=jnp.bfloat16, batch_tile=512,
                    vmem_limit_bytes=48 * 1024 * 1024,
                    trim_output=False, out_dtype=None):
    """Preferred entry point: x_nlc is (B, L, Cin) (no relayout needed).

    weight: (Cout, Cin, K) (torch Conv1d layout); bias: (Cout,).
    Returns (B, Cout_pad) by default (lane-dense, padded with zeros past Cout);
    pass trim_output=True to get the torch-shaped (B, Cout) result (costs an
    extra XLA slice pass over the output).
    """
    b_sz, length, c_in = x_nlc.shape
    c_out = weight.shape[0]
    l_out = length - kernel + 1
    cout_pad = _round_up(c_out, 128)                # lane-dense output columns
    out_dtype = x_nlc.dtype if out_dtype is None else out_dtype

    # Weight -> (K, Cin, Cout_pad), bias -> (1, Cout_pad); cast once on host.
    w = jnp.transpose(weight, (2, 1, 0))            # (K, Cin, Cout)
    w = jnp.pad(w, ((0, 0), (0, 0), (0, cout_pad - c_out))).astype(compute_dtype)
    b_pad = jnp.pad(bias, (0, cout_pad - c_out)).astype(jnp.float32)
    b_pad = b_pad.reshape(1, cout_pad)

    # Cast activations BEFORE the pallas_call so the DMA moves compute_dtype
    # bytes (halves HBM read traffic for the default bf16 path).  Ideally the
    # char-embedding producer already emits bf16 NLC directly.
    x_in = x_nlc.astype(compute_dtype)

    # Batch-tile selection:
    #   * tiny batches: single full-batch step;
    #   * otherwise target `batch_tile` rows but keep >= 4 grid steps so both
    #     v7x TensorCores get work and the pipeline has steps to overlap,
    #     rounding the tile to a multiple of 8 sublanes.  A partial last block
    #     (B % tb != 0) is handled by Pallas with masked stores; padded rows
    #     are row-independent garbage that never reaches the real output.
    if b_sz < 32:
        tb = b_sz
    else:
        n_steps = max(4, pl.cdiv(b_sz, batch_tile))
        tb = min(batch_tile, _round_up(pl.cdiv(b_sz, n_steps), 8))
    grid = (pl.cdiv(b_sz, tb),)

    kern = functools.partial(_cnn_kernel, kernel=kernel, l_out=l_out)

    out_pad = pl.pallas_call(
        kern,
        out_shape=jax.ShapeDtypeStruct((b_sz, cout_pad), out_dtype),
        grid=grid,
        in_specs=[
            pl.BlockSpec((tb, length, c_in), lambda i: (i, 0, 0)),
            pl.BlockSpec((kernel, c_in, cout_pad), lambda i: (0, 0, 0)),
            pl.BlockSpec((1, cout_pad), lambda i: (0, 0)),
        ],
        out_specs=pl.BlockSpec((tb, cout_pad), lambda i: (i, 0)),
        compiler_params=pltpu.CompilerParams(
            dimension_semantics=("parallel",),      # shard batch across v7x's 2 TCs
            vmem_limit_bytes=vmem_limit_bytes,      # above v5e/v6e defaults, < v7x 64 MiB
        ),
    )(x_in, w, b_pad)

    if trim_output:
        return out_pad[:, :c_out]
    return out_pad


def cnn_forward(x_ncw, weight, bias, *, kernel,
                compute_dtype=jnp.bfloat16, batch_tile=512,
                vmem_limit_bytes=48 * 1024 * 1024):
    """Torch-layout wrapper: x_ncw is (B, Cin, L) like the PyTorch module.

    Fallback path only: the NCW->NLC transpose is a full extra read+write of
    the input in HBM.  Prefer producing (B, L, Cin) upstream and calling
    cnn_forward_nlc.  Returns the torch-shaped (B, Cout) result.
    """
    x_nlc = jnp.transpose(x_ncw, (0, 2, 1))         # NCW -> NLC
    return cnn_forward_nlc(x_nlc, weight, bias, kernel=kernel,
                           compute_dtype=compute_dtype, batch_tile=batch_tile,
                           vmem_limit_bytes=vmem_limit_bytes,
                           trim_output=True)


def cnn_reference(x_ncw, weight, bias, *, kernel):
    """Pure-JAX reference matching torch Conv1d + ReLU + MaxPool1d + squeeze."""
    b_sz, c_in, length = x_ncw.shape
    c_out = weight.shape[0]
    l_out = length - kernel + 1
    out = jnp.zeros((b_sz, c_out, l_out), jnp.float32)
    for dk in range(kernel):
        # out[b,o,t] += sum_c W[o,c,dk] * x[b,c,t+dk]
        out = out + jnp.einsum('oc,bct->bot', weight[:, :, dk],
                               x_ncw[:, :, dk:dk + l_out])
    out = out + bias[None, :, None]
    out = jnp.maximum(out, 0.0)
    return jnp.max(out, axis=-1)


if __name__ == "__main__":
    # Module hyperparameters (consistent with the torch module defaults).
    word_embed_size = 32
    char_embed_size = 50
    kernel = 5
    word_length = 21

    key = jax.random.PRNGKey(0)
    k_x, k_w, k_b, k_x2 = jax.random.split(key, 4)

    weight = jax.random.normal(
        k_w, (word_embed_size, char_embed_size, kernel), jnp.float32) * 0.1
    bias = jax.random.normal(k_b, (word_embed_size,), jnp.float32) * 0.1

    # --- small batch (matches the torch module's per-word call) -------------
    batch = 2
    x = jax.random.normal(k_x, (batch, char_embed_size, word_length), jnp.float32)
    ref = cnn_reference(x, weight, bias, kernel=kernel)

    # f32 compute path -- strict numerical check (torch-layout wrapper).
    out_f32 = jax.block_until_ready(
        cnn_forward(x, weight, bias, kernel=kernel, compute_dtype=jnp.float32))
    assert out_f32.shape == (batch, word_embed_size), out_f32.shape
    assert jnp.allclose(out_f32, ref, atol=1e-4, rtol=1e-4), "f32 mismatch vs reference"

    # bf16 matmul-input path (MXU/DMA optimal on v6e/v7x) -- loose check.
    out_bf16 = jax.block_until_ready(
        cnn_forward(x, weight, bias, kernel=kernel, compute_dtype=jnp.bfloat16))
    assert out_bf16.shape == (batch, word_embed_size), out_bf16.shape
    assert jnp.allclose(out_bf16, ref, atol=5e-2, rtol=5e-2), "bf16 mismatch vs reference"

    # Padded, non-trimmed production path (NLC input, lane-dense output).
    x_nlc = jnp.transpose(x, (0, 2, 1))
    out_pad = jax.block_until_ready(
        cnn_forward_nlc(x_nlc, weight, bias, kernel=kernel,
                        compute_dtype=jnp.float32))
    assert out_pad.shape == (batch, 128), out_pad.shape
    assert jnp.allclose(out_pad[:, :word_embed_size], ref, atol=1e-4, rtol=1e-4)
    assert jnp.allclose(out_pad[:, word_embed_size:], 0.0)  # padded lanes stay zero

    # --- larger, non-divisible batch: exercises multi-step grid + remainder --
    batch2 = 600
    x2 = jax.random.normal(k_x2, (batch2, char_embed_size, word_length), jnp.float32)
    ref2 = cnn_reference(x2, weight, bias, kernel=kernel)
    out2 = jax.block_until_ready(
        cnn_forward(x2, weight, bias, kernel=kernel, compute_dtype=jnp.float32,
                    batch_tile=512))
    assert out2.shape == (batch2, word_embed_size), out2.shape
    assert jnp.allclose(out2, ref2, atol=1e-4, rtol=1e-4), "tiled f32 mismatch vs reference"

    print("KERNEL_OK")
</pallas_src>

<mosaic_0001>
module attributes {stable_mosaic.version = 11 : i64} {
  func.func @_cnn_kernel(%arg0: i32, %arg1: memref<2x21x50xf32, #tpu.memory_space<vmem>>, %arg2: memref<5x50x128xf32, #tpu.memory_space<vmem>>, %arg3: memref<1x128xf32, #tpu.memory_space<vmem>>, %arg4: memref<2x128xf32, #tpu.memory_space<vmem>>) attributes {dimension_semantics = [#tpu.dimension_semantics<parallel>], iteration_bounds = array<i64: 1>, scalar_prefetch = 0 : i64, scratch_operands = 0 : i64, tpu.core_type = #tpu.core_type<tc>, window_params = [{transform_indices = @transform_0, window_bounds = array<i64: 2, 21, 50>}, {pipeline_mode = #tpu.pipeline_mode<synchronous>, transform_indices = @transform_1, window_bounds = array<i64: 5, 50, 128>}, {pipeline_mode = #tpu.pipeline_mode<synchronous>, transform_indices = @transform_2, window_bounds = array<i64: 1, 128>}, {transform_indices = @transform_3, window_bounds = array<i64: 2, 128>}]} {
    %c0 = arith.constant 0 : index
    %c0_0 = arith.constant 0 : index
    %c0_1 = arith.constant 0 : index
    %0 = vector.load %arg1[%c0, %c0_0, %c0_1] : memref<2x21x50xf32, #tpu.memory_space<vmem>>, vector<2x21x50xf32>
    %1 = vector.extract_strided_slice %0 {offsets = [0, 0, 0], sizes = [2, 17, 50], strides = [1, 1, 1]} : vector<2x21x50xf32> to vector<2x17x50xf32>
    %c0_2 = arith.constant 0 : index
    %c0_3 = arith.constant 0 : index
    %c0_4 = arith.constant 0 : index
    %2 = vector.load %arg2[%c0_2, %c0_3, %c0_4] : memref<5x50x128xf32, #tpu.memory_space<vmem>>, vector<1x50x128xf32>
    %3 = vector.shape_cast %2 : vector<1x50x128xf32> to vector<50x128xf32>
    %cst = arith.constant dense<0.000000e+00> : vector<2x17x128xf32>
    %4 = tpu.matmul %1, %3, %cst {dimension_numbers = #tpu.dot_dimension_numbers<[2], [0], [0, 1], [1], [0, 0, 0, 1, 1, 1], [], []>} : vector<2x17x50xf32>, vector<50x128xf32>, vector<2x17x128xf32> -> vector<2x17x128xf32>
    %5 = vector.extract_strided_slice %0 {offsets = [0, 1, 0], sizes = [2, 17, 50], strides = [1, 1, 1]} : vector<2x21x50xf32> to vector<2x17x50xf32>
    %c1 = arith.constant 1 : index
    %c0_5 = arith.constant 0 : index
    %c0_6 = arith.constant 0 : index
    %6 = vector.load %arg2[%c1, %c0_5, %c0_6] : memref<5x50x128xf32, #tpu.memory_space<vmem>>, vector<1x50x128xf32>
    %7 = vector.shape_cast %6 : vector<1x50x128xf32> to vector<50x128xf32>
    %cst_7 = arith.constant dense<0.000000e+00> : vector<2x17x128xf32>
    %8 = tpu.matmul %5, %7, %cst_7 {dimension_numbers = #tpu.dot_dimension_numbers<[2], [0], [0, 1], [1], [0, 0, 0, 1, 1, 1], [], []>} : vector<2x17x50xf32>, vector<50x128xf32>, vector<2x17x128xf32> -> vector<2x17x128xf32>
    %9 = arith.addf %4, %8 : vector<2x17x128xf32>
    %10 = vector.extract_strided_slice %0 {offsets = [0, 2, 0], sizes = [2, 17, 50], strides = [1, 1, 1]} : vector<2x21x50xf32> to vector<2x17x50xf32>
    %c2 = arith.constant 2 : index
    %c0_8 = arith.constant 0 : index
    %c0_9 = arith.constant 0 : index
    %11 = vector.load %arg2[%c2, %c0_8, %c0_9] : memref<5x50x128xf32, #tpu.memory_space<vmem>>, vector<1x50x128xf32>
    %12 = vector.shape_cast %11 : vector<1x50x128xf32> to vector<50x128xf32>
    %cst_10 = arith.constant dense<0.000000e+00> : vector<2x17x128xf32>
    %13 = tpu.matmul %10, %12, %cst_10 {dimension_numbers = #tpu.dot_dimension_numbers<[2], [0], [0, 1], [1], [0, 0, 0, 1, 1, 1], [], []>} : vector<2x17x50xf32>, vector<50x128xf32>, vector<2x17x128xf32> -> vector<2x17x128xf32>
    %14 = arith.addf %9, %13 : vector<2x17x128xf32>
    %15 = vector.extract_strided_slice %0 {offsets = [0, 3, 0], sizes = [2, 17, 50], strides = [1, 1, 1]} : vector<2x21x50xf32> to vector<2x17x50xf32>
    %c3 = arith.constant 3 : index
    %c0_11 = arith.constant 0 : index
    %c0_12 = arith.constant 0 : index
    %16 = vector.load %arg2[%c3, %c0_11, %c0_12] : memref<5x50x128xf32, #tpu.memory_space<vmem>>, vector<1x50x128xf32>
    %17 = vector.shape_cast %16 : vector<1x50x128xf32> to vector<50x128xf32>
    %cst_13 = arith.constant dense<0.000000e+00> : vector<2x17x128xf32>
    %18 = tpu.matmul %15, %17, %cst_13 {dimension_numbers = #tpu.dot_dimension_numbers<[2], [0], [0, 1], [1], [0, 0, 0, 1, 1, 1], [], []>} : vector<2x17x50xf32>, vector<50x128xf32>, vector<2x17x128xf32> -> vector<2x17x128xf32>
    %19 = arith.addf %14, %18 : vector<2x17x128xf32>
    %20 = vector.extract_strided_slice %0 {offsets = [0, 4, 0], sizes = [2, 17, 50], strides = [1, 1, 1]} : vector<2x21x50xf32> to vector<2x17x50xf32>
    %c4 = arith.constant 4 : index
    %c0_14 = arith.constant 0 : index
    %c0_15 = arith.constant 0 : index
    %21 = vector.load %arg2[%c4, %c0_14, %c0_15] : memref<5x50x128xf32, #tpu.memory_space<vmem>>, vector<1x50x128xf32>
    %22 = vector.shape_cast %21 : vector<1x50x128xf32> to vector<50x128xf32>
    %cst_16 = arith.constant dense<0.000000e+00> : vector<2x17x128xf32>
    %23 = tpu.matmul %20, %22, %cst_16 {dimension_numbers = #tpu.dot_dimension_numbers<[2], [0], [0, 1], [1], [0, 0, 0, 1, 1, 1], [], []>} : vector<2x17x50xf32>, vector<50x128xf32>, vector<2x17x128xf32> -> vector<2x17x128xf32>
    %24 = arith.addf %19, %23 : vector<2x17x128xf32>
    %cst_17 = arith.constant dense<0xFF800000> : vector<2x128xf32>
    %25 = vector.multi_reduction <maximumf>, %24, %cst_17 [1] : vector<2x17x128xf32> to vector<2x128xf32>
    %c0_18 = arith.constant 0 : index
    %c0_19 = arith.constant 0 : index
    %26 = vector.load %arg3[%c0_18, %c0_19] : memref<1x128xf32, #tpu.memory_space<vmem>>, vector<1x128xf32>
    %27 = vector.broadcast %26 : vector<1x128xf32> to vector<2x128xf32>
    %28 = arith.addf %25, %27 : vector<2x128xf32>
    %cst_20 = arith.constant 0.000000e+00 : f32
    %29 = vector.broadcast %cst_20 : f32 to vector<2x128xf32>
    %30 = arith.maximumf %28, %29 : vector<2x128xf32>
    %c0_21 = arith.constant 0 : index
    %c0_22 = arith.constant 0 : index
    %31 = vector.load %arg4[%c0_21, %c0_22] : memref<2x128xf32, #tpu.memory_space<vmem>>, vector<2x128xf32>
    tpu.vector_store %arg4[%c0_21, %c0_22], %30 {strides = array<i32>} : memref<2x128xf32, #tpu.memory_space<vmem>>, vector<2x128xf32>,
    return
  }
  func.func @transform_0(%arg0: i32) -> (i32, i32, i32) {
    %c0_i32 = arith.constant 0 : i32
    %c0_i32_0 = arith.constant 0 : i32
    %c0_i32_1 = arith.constant 0 : i32
    return %arg0, %c0_i32, %c0_i32_0 : i32, i32, i32
  }
  func.func @transform_1(%arg0: i32) -> (i32, i32, i32) {
    %c0_i32 = arith.constant 0 : i32
    %c0_i32_0 = arith.constant 0 : i32
    %c0_i32_1 = arith.constant 0 : i32
    %c0_i32_2 = arith.constant 0 : i32
    return %c0_i32, %c0_i32_0, %c0_i32_1 : i32, i32, i32
  }
  func.func @transform_2(%arg0: i32) -> (i32, i32) {
    %c0_i32 = arith.constant 0 : i32
    %c0_i32_0 = arith.constant 0 : i32
    %c0_i32_1 = arith.constant 0 : i32
    return %c0_i32, %c0_i32_0 : i32, i32
  }
  func.func @transform_3(%arg0: i32) -> (i32, i32) {
    %c0_i32 = arith.constant 0 : i32
    %c0_i32_0 = arith.constant 0 : i32
    return %arg0, %c0_i32 : i32, i32
  }
}

</mosaic_0001>

<bundles_post_ra>
// kernel: tpu_custom_call.1
= control target key start
LH: loop header
LB: loop body
LE: loop exit
PB: predicated region body
PF: predicated region fallthrough
CT: control target
= control target key end

     0   :  { %8 = vsyncpa [#allocation3], 0  ;;  %s4316_s0 = inlined_call_operand.vmem [shape: f32[2,21,50], index: 0, kind: input, shape index: {}]   ;;  %s4317_s1 = inlined_call_operand.hbm [shape: f32[5,50,128], index: 1, kind: input, shape index: {}]   ;;  %s4318_s2 = inlined_call_operand.vmem [shape: f32[1,128], index: 2, kind: input, shape index: {}]   ;;  %s4319_s3 = inlined_call_operand.hbm [shape: f32[2,128], index: 3, kind: output, shape index: {}]  }
   0x1   :  { %9 = vsyncpa [#allocation4], 0  ;;  %s3369_s12 = smov [#allocation2]   ;;  %s3321_s16 = scalar_lea.hbm %s4317_s1, 4480 }
   0x2   :  { %s17_s13 = sshll.u32 %s3369_s12, 4  ;;  %p3322_p0 = scmp.ne.s32.totalorder %s4317_s1, %s3321_s16  ;;  %s18_s13 = int_to_ptr.vmem [resolvable:$true] %s17_s13 }
   0x3   :  { %p3325_p1 = scmp.lt.u32.totalorder %s3321_s16, %s4317_s1 }
   0x5   :  { %p3327_p2 = pnand %p3325_p1, %p3322_p0 }
   0x7   :  { %3330 = shalt.err (!%p3327_p2)
}
   0x8   :  { %s3331_s21 = scalar_lea.vmem %s18_s13, 4480  ;;  %p3336_p4 = scmp.lt.s32.totalorder %s18_s13, %s18_s13 }
   0x9   :  { %p3332_p3 = scmp.ne.s32.totalorder %s18_s13, %s3331_s21  ;;  %p3337_p5 = scmp.lt.s32.totalorder %s3331_s21, %s3331_s21 }
   0xb   :  { %p3338_p6 = por %p3337_p5, %p3336_p4 }
   0xd   :  { %p3339_p7 = pnand %p3338_p6, %p3332_p3 }
   0xf   :  { %3342 = shalt.err (!%p3339_p7)
}
  0x10   :  { %s3370_s22 = smov 128   ;;  %s3371_s23 = smov 8  }
  0x11   :  { %23 = dma.hbm_to_vmem [thread:$0]  %s4317_s1, 4480, %s18_s13, [#allocation3], %s3370_s22, %s3370_s22, %s3371_s23  }
  0x12   :  { %3365 = dma.done.wait [#allocation3], 4480  }
  0x13   :  { %3366 = vsyncadd [#allocation3], 4294962816  ;;  %v3372_v0 = vmov 0.0|0.0   ;;  %v60_v1 = vlaneseq  ;;  %vm3373_vm0 = vmmov 0   ;;  %v3374_v2 = vmov 0.0   ;;  %v1184_v7 = vld [vmem:[#allocation2 + $0x70] sm:$0xff] }
  0x14   :  { %3262 = vmatprep.subr.bf16.mxu1 %v3372_v0  ;;  %3244 = vmatprep.subr.bf16.mxu0 %v3372_v0  ;;  %v3375_v3 = vmov 1966171168   ;;  %v1185_v8 = vld [vmem:[#allocation2 + $0x78] sm:$0xff]  ;;  %v44_v11 = vld [vmem:[#allocation2 + $0x40] sm:$0xff]  ;;  %v1187_v13 = vld [vmem:[#allocation2 + $0x88] sm:$0xff]  ;;  %vm518_vm1 = vcmask 1041408  }
  0x15   :  { %3171 = vmatprep.mubr.msk.f32.mxu1 %vm3373_vm0, %v3374_v2  ;;  %v58_v4 = vunpack.c.l.s4 %v3375_v3  ;;  %3113 = vmatprep.mubr.msk.f32.mxu0 %vm3373_vm0, %v3374_v2  ;;  %v61_v6 = vshrl.u32 %v60_v1, 7  ;;  %v43_v9 = vld [vmem:[#allocation2 + $0x38] sm:$0xff]  ;;  %v3263_v10 = vpack.c.bf16 %v1185_v8, %v1184_v7  ;;  %v1186_v12 = vld [vmem:[#allocation2 + $0x80] sm:$0xff]  ;;  %v45_v16 = vld [vmem:[#allocation2 + $0x48] sm:$0xff]  ;;  %vm507_vm2 = vcmask 408576   ;;  %s3376_s11 = smov [#allocation5]  }
  0x16   :  { %v3245_v15 = vpack.c.bf16 %v44_v11, %v43_v9  ;;  %v46_v17 = vld [vmem:[#allocation2 + $0x50] sm:$0xff]  ;;  %v3266_v18 = vpack.c.bf16 %v1187_v13, %v1186_v12  ;;  %v1189_v20 = vld [vmem:[#allocation2 + $0x98] sm:$0xff]  ;;  %v48_v23 = vld [vmem:[#allocation2 + $0x60] sm:$0xff]  ;;  %vm2944_vm3 = vcmask 1040384   ;;  %s2987_s12 = sshll.u32 %s3376_s11, 4  ;;  %vm2977_vm4 = vcmask 1041409   ;;  %s2988_s12 = int_to_ptr.vmem [resolvable:$true] %s2987_s12 }
  0x17   :  { %v59_v5 = vunpack.c.0.s8 %v58_v4  ;;  %3264 = vmatpush3.bf16.msra.mxu1 %v3263_v10  ;;  %v1188_v19 = vld [vmem:[#allocation2 + $0x90] sm:$0xff]  ;;  %v3248_v21 = vpack.c.bf16 %v46_v17, %v45_v16  ;;  %v47_v22 = vld [vmem:[#allocation2 + $0x58] sm:$0xff]  ;;  %v3436_v37 = vld [vmem:[%s4316_s0 + $0x10] sm:$0x1f]  ;;  %s3343_s13 = scalar_lea.vmem %s2988_s12, 32  ;;  %p3348_p9 = scmp.lt.s32.totalorder %s2988_s12, %s2988_s12 }
  0x18   :  { %3246 = vmatpush3.bf16.msra.mxu0 %v3245_v15  ;;  %3265 = vmatprep.subr.bf16.mxu1 %v3372_v0  ;;  %v29_v24 = vld [vmem:[%s4316_s0] sm:$0xff]  ;;  %v30_v25 = vld [vmem:[%s4316_s0 + $0x8] sm:$0xff]  ;;  %v3269_v28 = vpack.c.bf16 %v1189_v20, %v1188_v19  ;;  %v3251_v31 = vpack.c.bf16 %v48_v23, %v47_v22  ;;  %v1190_v48 = vld [vmem:[#allocation2 + $0xa0] sm:$0x3]  ;;  %p3344_p8 = scmp.ne.s32.totalorder %s2988_s12, %s3343_s13  ;;  %p3349_p10 = scmp.lt.s32.totalorder %s3343_s13, %s3343_s13 }
  0x19   :  { %v3415_v14 = vsub.s32 %v59_v5, %v61_v6  ;;  %3247 = vmatprep.subr.bf16.mxu0 %v3372_v0  ;;  %v56_v26 = vcombine.high %v29_v24, %v29_v24  ;;  %v105_v30 = vcombine.high %v30_v25, %v30_v25  ;;  %v49_v52 = vld [vmem:[#allocation2 + $0x68] sm:$0x3]  ;;  %v35_v7 = vld [vmem:[#allocation2] sm:$0xff] }
  0x1a   :  { %v36_v8 = vld [vmem:[#allocation2 + $0x8] sm:$0xff]  ;;  %p3350_p11 = por %p3349_p10, %p3348_p9 }
  0x1b   :  { %v63_v27 = vrot.slane %v29_v24, %v3415_v14  ;;  %v112_v29 = vrot.slane %v30_v25, %v3415_v14  ;;  %3267 = vmatpush3.bf16.msra.mxu1 %v3266_v18  ;;  %v70_v32 = vrot.slane %v56_v26, %v3415_v14  ;;  %v119_v38 = vrot.slane %v105_v30, %v3415_v14 }
  0x1c   :  { %3249 = vmatpush3.bf16.msra.mxu0 %v3248_v21  ;;  %3268 = vmatprep.subr.bf16.mxu1 %v3372_v0  ;;  %v160_v47 = vrot.slane %v3436_v37, %v3415_v14  ;;  %v3254_v19 = vpack.c.bf16 %v36_v8, %v35_v7  ;;  %p3351_p12 = pnand %p3350_p11, %p3344_p8 }
  0x1d   :  { %v71_v33 = vcombine.high %v63_v27, %v63_v27  ;;  %v79_v34 = vrot.slane %v63_v27, %v3415_v14  ;;  %v120_v35 = vcombine.high %v112_v29, %v112_v29  ;;  %v3431_v36 = vrot.slane %v112_v29, %v3415_v14  ;;  %3250 = vmatprep.subr.bf16.mxu0 %v3372_v0 }
  0x1e   :  { %v72_v39 = vcombine.high %v70_v32, %v70_v32  ;;  %v86_v40 = vrot.slane %v70_v32, %v3415_v14  ;;  %v121_v56 = vcombine.high %v119_v38, %v119_v38  ;;  %v161_v1 = vcombine.high %v160_v47, %v160_v47 }
  0x1f   :  { %v93_v41 = vrot.slane %v71_v33, %v3415_v14  ;;  %v101_v42 = vcombine.high %v79_v34, %v79_v34  ;;  %v3443_v43 = vrot.slane %v120_v35, %v3415_v14  ;;  %3270 = vmatpush3.bf16.msra.mxu1 %v3269_v28  ;;  %v135_v11 = vrot.slane %v119_v38, %v3415_v14  ;;  %v37_v33 = vld [vmem:[#allocation2 + $0x10] sm:$0xff] }
  0x20   :  { %v100_v44 = vrot.slane %v72_v39, %v3415_v14  ;;  %v102_v46 = vcombine.high %v86_v40, %v86_v40  ;;  %3252 = vmatpush3.bf16.msra.mxu0 %v3251_v31  ;;  %3169 = vmatprep.subr.mxu1 %v3374_v2  ;;  %v149_v12 = vrot.slane %v121_v56, %v3415_v14 }
  0x21   :  { %v3006_v45 = vcombine.high %v79_v34, %v93_v41  ;;  %v661_v49 = vcombine.low %v3431_v36, %v3443_v43  ;;  %v103_v50 = vcombine.high %v93_v41, %v93_v41  ;;  %v296_v51 = vcombine.low %v93_v41, %v101_v42  ;;  %3111 = vmatprep.subr.mxu0 %v3374_v2  ;;  %v1688_v42 = vld [vmem:[#allocation2 + $0xb0] sm:$0xff] }
  0x22   :  { %v614_v53 = vcombine.low %v86_v40, %v100_v44  ;;  %v3007_v54 = vcombine.high %v86_v40, %v100_v44  ;;  %v104_v58 = vcombine.high %v100_v44, %v100_v44  ;;  %v298_v60 = vcombine.low %v100_v44, %v102_v46 }
  0x23   :  { %v3453_v55 = vrot.slane %v3006_v45, %v3415_v14  ;;  %v3456_v57 = vrot.slane %v661_v49, %v3415_v14  ;;  %v297_v59 = vcombine.low %v103_v50, %v86_v40  ;;  %3170 = vmatpush3.msk.msra.mxu1 %vm518_vm1, %v1190_v48  ;;  %v306_v63 = vrot.slane %v296_v51, %v3415_v14  ;;  %v32_v51 = vld [vmem:[%s4316_s0 + $0x18] sm:$0xff] }
  0x24   :  { %v3460_v61 = vrot.slane %v614_v53, %v3415_v14  ;;  %v3463_v62 = vrot.slane %v3007_v54, %v3415_v14  ;;  %3112 = vmatpush3.msk.msra.mxu0 %vm518_vm1, %v49_v52  ;;  %v612_v3 = vcombine.low %v79_v34, %v93_v41  ;;  %v299_v4 = vcombine.low %v104_v58, %v3431_v36  ;;  %v38_v34 = vld [vmem:[#allocation2 + $0x18] sm:$0xff]  ;;  %v1687_v41 = vld [vmem:[#allocation2 + $0xa8] sm:$0xff] }
  0x25   :  { %v3469_v5 = vrot.slane %v297_v59, %v3415_v14  ;;  %v3472_v6 = vrot.slane %v298_v60, %v3415_v14  ;;  %3253 = vmatprep.subr.bf16.mxu0 %v3372_v0  ;;  %v3486_v16 = vrot.slane %v160_v47, %v3415_v14  ;;  %3271 = vmatprep.subr.bf16.mxu1 %v3372_v0  ;;  %v1689_v60 = vld [vmem:[#allocation2 + $0xb8] sm:$0xff] }
  0x26   :  { %v1193_v9 = vcombine.low %v3453_v55, %v3460_v61  ;;  %v1194_v10 = vcombine.low %v3463_v62, %v3456_v57  ;;  %v3482_v13 = vrot.slane %v299_v4, %v3415_v14  ;;  %v3492_v20 = vrot.slane %v161_v1, %v3415_v14  ;;  %v33_v4 = vld [vmem:[%s4316_s0 + $0x20] sm:$0xff] }
  0x27   :  { %v328_v15 = vcombine.low %v306_v63, %v3469_v5  ;;  %v3495_v21 = vrot.slane %v612_v3, %v3415_v14  ;;  %v3008_v24 = vcombine.high %v3431_v36, %v3443_v43  ;;  %v663_v26 = vcombine.low %v135_v11, %v149_v12  ;;  %v1690_v63 = vld [vmem:[#allocation2 + $0xc0] sm:$0xff] }
  0x28   :  { %v1201_v17 = vrot.slane %v1193_v9, %v3415_v14  ;;  %v1208_v18 = vrot.slane %v1194_v10, %v3415_v14  ;;  %v329_v22 = vcombine.low %v3472_v6, %v3482_v13  ;;  %v3009_v27 = vcombine.high %v135_v11, %v149_v12 }
  0x29   :  { %v336_v23 = vrot.slane %v328_v15, %v3415_v14  ;;  %v1210_v28 = vcombine.low %v3486_v16, %v3492_v20  ;;  %v3506_v30 = vrot.slane %v3008_v24, %v3415_v14  ;;  %v150_v31 = vcombine.high %v3431_v36, %v3431_v36 }
  0x2a   :  { %v1209_v25 = vcombine.low %v1201_v17, %v1208_v18  ;;  %v343_v29 = vrot.slane %v329_v22, %v3415_v14  ;;  %v151_v32 = vcombine.high %v135_v11, %v135_v11  ;;  %v3512_v35 = vrot.slane %v663_v26, %v3415_v14  ;;  %v40_v22 = vld [vmem:[#allocation2 + $0x28] sm:$0xff] }
  0x2b   :  { %v3515_v38 = vrot.slane %v3009_v27, %v3415_v14  ;;  %v3518_v39 = vrot.slane %v1210_v28, %v3415_v14  ;;  %v152_v40 = vcombine.high %v3443_v43, %v3443_v43  ;;  %v153_v44 = vcombine.high %v149_v12, %v149_v12 }
  0x2c   :  { %3172 = vmatmul.mubr.msk.f32.vlgmr.msra.gmra.mrb[0].mxu1 %vm507_vm2, %v1209_v25  ;;  %v344_v36 = vcombine.low %v336_v23, %v343_v29  ;;  %v345_v45 = vcombine.low %v3443_v43, %v150_v31  ;;  %v347_v46 = vcombine.low %v149_v12, %v151_v32  ;;  %v1218_v47 = vcombine.low %v3506_v30, %v3512_v35 }
  0x2d   :  { %3174 = vmatprep.mubr.msk.f32.mxu1 %vm3373_vm0, %v3374_v2  ;;  %v1219_v48 = vcombine.low %v3515_v38, %v3518_v39  ;;  %v346_v49 = vcombine.low %v152_v40, %v135_v11  ;;  %v3257_v50 = vpack.c.bf16 %v38_v34, %v37_v33  ;;  %v348_v52 = vcombine.low %v153_v44, %v3486_v16 }
  0x2e   :  { %3114 = vmatmul.mubr.msk.f32.vlgmr.msra.gmra.mrb[0].mxu0 %vm507_vm2, %v344_v36  ;;  %v3535_v53 = vrot.slane %v345_v45, %v3415_v14  ;;  %v3538_v43 = vrot.slane %v347_v46, %v3415_v14  ;;  %v3272_v54 = vpack.c.bf16 %v1688_v42, %v1687_v41  ;;  %v1226_v56 = vrot.slane %v1218_v47, %v3415_v14 }
  0x2f   :  { %3255 = vmatpush3.bf16.msra.mxu0 %v3254_v19  ;;  %v1233_v58 = vrot.slane %v1219_v48, %v3415_v14  ;;  %3116 = vmatprep.mubr.msk.f32.mxu0 %vm3373_vm0, %v3374_v2  ;;  %v3545_v59 = vrot.slane %v346_v49, %v3415_v14  ;;  %v1696_v1 = vcombine.low %v3469_v5, %v3472_v6  ;;  %v39_v19 = vld [vmem:[#allocation2 + $0x20] sm:$0xff] }
  0x30   :  { %v3550_v3 = vrot.slane %v348_v52, %v3415_v14  ;;  %3256 = vmatprep.subr.bf16.mxu0 %v3372_v0  ;;  %3273 = vmatpush3.bf16.msra.mxu1 %v3272_v54  ;;  %v176_v7 = vcombine.high %v32_v51, %v32_v51  ;;  %v183_v10 = vrot.slane %v32_v51, %v3415_v14  ;;  %v41_v51 = vld [vmem:[#allocation2 + $0x30] sm:$0x3] }
  0x31   :  { %v1234_v8 = vcombine.low %v1226_v56, %v1233_v58  ;;  %v377_v9 = vcombine.low %v3535_v53, %v3545_v59  ;;  %v3560_v11 = vrot.slane %v33_v4, %v3415_v14  ;;  %3274 = vmatprep.subr.bf16.mxu1 %v3372_v0  ;;  %v1697_v15 = vcombine.low %v3482_v13, %v3535_v53 }
  0x32   :  { %v378_v12 = vcombine.low %v3538_v43, %v3550_v3  ;;  %v190_v17 = vrot.slane %v176_v7, %v3415_v14  ;;  %v3275_v18 = vpack.c.bf16 %v1690_v63, %v1689_v60  ;;  %v191_v24 = vcombine.high %v183_v10, %v183_v10 }
  0x33   :  { %3175 = vmatmul.mubr.msk.f32.gmra.mrb[2].mxu1 %vm507_vm2, %v1234_v8  ;;  %v385_v23 = vrot.slane %v377_v9, %v3415_v14  ;;  %3258 = vmatpush3.bf16.msra.mxu0 %v3257_v50  ;;  %v3571_v25 = vrot.slane %v183_v10, %v3415_v14  ;;  %v3581_v29 = vrot.slane %v3560_v11, %v3415_v14  ;;  %v3626_v10 = vld [vmem:[%s4316_s0 + $0x28] sm:$0x1f] }
  0x34   :  { %v392_v26 = vrot.slane %v378_v12, %v3415_v14  ;;  %3177 = vmatprep.mubr.msk.f32.mxu1 %vm3373_vm0, %v3374_v2  ;;  %v192_v27 = vcombine.high %v190_v17, %v190_v17  ;;  %v3577_v28 = vrot.slane %v190_v17, %v3415_v14  ;;  %v3584_v31 = vrot.slane %v191_v24, %v3415_v14 }
  0x35   :  { %v3016_v32 = vcombine.high %v3486_v16, %v3571_v25  ;;  %3259 = vmatprep.subr.bf16.mxu0 %v3372_v0  ;;  %3276 = vmatpush3.bf16.msra.mxu1 %v3275_v18  ;;  %v3260_v33 = vpack.c.bf16 %v40_v22, %v39_v19  ;;  %v225_v42 = vcombine.high %v33_v4, %v33_v4 }
  0x36   :  { %v393_v34 = vcombine.low %v385_v23, %v392_v26  ;;  %v220_v40 = vrot.slane %v192_v27, %v3415_v14  ;;  %v222_v41 = vcombine.high %v3577_v28, %v3577_v28  ;;  %3277 = vmatprep.subr.bf16.mxu1 %v3372_v0  ;;  %v223_v36 = vcombine.high %v3584_v31, %v3584_v31 }
  0x37   :  { %v1242_v44 = vrot.slane %v3016_v32, %v3415_v14  ;;  %v394_v45 = vcombine.low %v3492_v20, %v3584_v31  ;;  %v2996_v46 = vcombine.high %v3571_v25, %v3584_v31  ;;  %3261 = vmatpush3.bf16.msra.mxu0 %v3260_v33  ;;  %v239_v58 = vrot.slane %v225_v42, %v3415_v14 }
  0x38   :  { %3117 = vmatmul.mubr.msk.f32.gmra.mrb[2].mxu0 %vm507_vm2, %v393_v34  ;;  %v224_v47 = vcombine.high %v220_v40, %v220_v40  ;;  %v713_v48 = vcombine.low %v220_v40, %v222_v41  ;;  %v396_v49 = vcombine.low %v3577_v28, %v220_v40  ;;  %v2997_v50 = vcombine.high %v3577_v28, %v220_v40 }
  0x39   :  { %v712_v52 = vcombine.low %v223_v36, %v3577_v28  ;;  %3119 = vmatprep.mubr.msk.f32.mxu0 %vm3373_vm0, %v3374_v2  ;;  %v404_v54 = vrot.slane %v394_v45, %v3415_v14  ;;  %v411_v56 = vrot.slane %v2996_v46, %v3415_v14  ;;  %3140 = vmatprep.subr.mxu0 %v3374_v2 }
  0x3a   :  { %v3610_v60 = vrot.slane %v713_v48, %v3415_v14  ;;  %v759_v63 = vcombine.low %v224_v47, %v3581_v29  ;;  %v3614_v4 = vrot.slane %v396_v49, %v3415_v14  ;;  %v3617_v7 = vrot.slane %v2997_v50, %v3415_v14 }
  0x3b   :  { %v3621_v8 = vrot.slane %v712_v52, %v3415_v14  ;;  %v426_v9 = vcombine.low %v404_v54, %v411_v56  ;;  %v240_v12 = vcombine.high %v3560_v11, %v3560_v11  ;;  %v241_v17 = vcombine.high %v239_v58, %v239_v58  ;;  %3141 = vmatpush3.msk.msra.mxu0 %vm518_vm1, %v41_v51  ;;  %v1691_v54 = vld [vmem:[#allocation2 + $0xc8] sm:$0xff]  ;;  %v1692_v56 = vld [vmem:[#allocation2 + $0xd0] sm:$0xff] }
  0x3c   :  { %v3632_v18 = vrot.slane %v759_v63, %v3415_v14  ;;  %v427_v19 = vcombine.low %v3614_v4, %v3617_v7  ;;  %v255_v22 = vrot.slane %v239_v58, %v3415_v14  ;;  %v270_v23 = vcombine.high %v3581_v29, %v3581_v29  ;;  %3280 = vmatprep.subr.bf16.mxu0 %v3372_v0 }
  0x3d   :  { %v1243_v24 = vcombine.low %v1242_v44, %v3621_v8  ;;  %v434_v11 = vrot.slane %v426_v9, %v3415_v14  ;;  %v262_v26 = vrot.slane %v240_v12, %v3415_v14  ;;  %v269_v27 = vrot.slane %v241_v17, %v3415_v14 }
  0x3e   :  { %v1244_v32 = vcombine.low %v3610_v60, %v3632_v18  ;;  %v441_v33 = vrot.slane %v427_v19, %v3415_v14  ;;  %v271_v34 = vcombine.high %v255_v22, %v255_v22  ;;  %v280_v40 = vrot.slane %v3626_v10, %v3415_v14 }
  0x3f   :  { %v1251_v41 = vrot.slane %v1243_v24, %v3415_v14  ;;  %v272_v42 = vcombine.high %v262_v26, %v262_v26  ;;  %v273_v36 = vcombine.high %v269_v27, %v269_v27  ;;  %v760_v44 = vcombine.low %v262_v26, %v270_v23 }
  0x40   :  { %v1258_v45 = vrot.slane %v1244_v32, %v3415_v14  ;;  %v442_v46 = vcombine.low %v434_v11, %v441_v33  ;;  %v3652_v47 = vrot.slane %v280_v40, %v3415_v14  ;;  %v762_v48 = vcombine.low %v269_v27, %v271_v34 }
  0x41   :  { %v761_v49 = vcombine.low %v272_v42, %v255_v22  ;;  %v3655_v50 = vrot.slane %v760_v44, %v3415_v14  ;;  %v443_v51 = vcombine.low %v3581_v29, %v262_v26  ;;  %v2998_v52 = vcombine.high %v3581_v29, %v262_v26 }
  0x42   :  { %v1259_v58 = vcombine.low %v1251_v41, %v1258_v45  ;;  %3120 = vmatmul.mubr.msk.f32.gmra.mrb[4].mxu0 %vm507_vm2, %v442_v46  ;;  %v3661_v63 = vrot.slane %v762_v48, %v3415_v14  ;;  %v808_v9 = vcombine.low %v273_v36, %v3652_v47  ;;  %v445_v12 = vcombine.low %v255_v22, %v269_v27 }
  0x43   :  { %v3665_v17 = vrot.slane %v761_v49, %v3415_v14  ;;  %3122 = vmatprep.mubr.msk.f32.mxu0 %vm3373_vm0, %v3374_v2  ;;  %v2999_v19 = vcombine.high %v255_v22, %v269_v27  ;;  %v3670_v29 = vrot.slane %v443_v51, %v3415_v14  ;;  %v3673_v23 = vrot.slane %v2998_v52, %v3415_v14 }
  0x44   :  { %3178 = vmatmul.mubr.msk.f32.gmra.mrb[4].mxu1 %vm507_vm2, %v1259_v58  ;;  %v3677_v24 = vrot.slane %v808_v9, %v3415_v14  ;;  %v3680_v11 = vrot.slane %v445_v12, %v3415_v14  ;;  %v3278_v26 = vpack.c.bf16 %v1692_v56, %v1691_v54  ;;  %v281_v32 = vcombine.high %v280_v40, %v280_v40 }
  0x45   :  { %3180 = vmatprep.mubr.msk.f32.mxu1 %vm3373_vm0, %v3374_v2  ;;  %v1260_v22 = vcombine.low %v3655_v50, %v3665_v17  ;;  %v3687_v27 = vrot.slane %v2999_v19, %v3415_v14  ;;  %v475_v33 = vcombine.low %v3670_v29, %v3673_v23  ;;  %v1192_v34 = vcombine.high %v3652_v47, %v3652_v47 }
  0x46   :  { %v644_v41 = vcombine.low %v3495_v21, %v3453_v55  ;;  %v1261_v40 = vcombine.low %v3661_v63, %v3677_v24  ;;  %3279 = vmatpush3.bf16.msra.mxu1 %v3278_v26  ;;  %v3698_v42 = vrot.slane %v281_v32, %v3415_v14  ;;  %v645_v36 = vcombine.low %v3460_v61, %v3463_v62  ;;  %v1693_v55 = vld [vmem:[#allocation2 + $0xd8] sm:$0x3] }
  0x47   :  { %v1268_v44 = vrot.slane %v1260_v22, %v3415_v14  ;;  %v476_v45 = vcombine.low %v3680_v11, %v3687_v27  ;;  %v483_v46 = vrot.slane %v475_v33, %v3415_v14  ;;  %3198 = vmatprep.subr.mxu1 %v3374_v2  ;;  %v1191_v61 = vcombine.high %v3486_v16, %v3486_v16 }
  0x48   :  { %v1275_v21 = vrot.slane %v1261_v40, %v3415_v14  ;;  %v1277_v48 = vcombine.low %v3698_v42, %v1192_v34  ;;  %v492_v49 = vcombine.low %v3652_v47, %v3698_v42  ;;  %v1704_v62 = vrot.slane %v1696_v1, %v3415_v14 }
  0x49   :  { %v1711_v51 = vrot.slane %v1697_v15, %v3415_v14  ;;  %v490_v52 = vrot.slane %v476_v45, %v3415_v14  ;;  %v1713_v9 = vcombine.low %v3492_v20, %v1191_v61  ;;  %v652_v5 = vrot.slane %v644_v41, %v3415_v14 }
  0x4a   :  { %v1276_v54 = vcombine.low %v1268_v44, %v1275_v21  ;;  %v3723_v56 = vrot.slane %v1277_v48, %v3415_v14  ;;  %v3726_v58 = vrot.slane %v492_v49, %v3415_v14  ;;  %3199 = vmatpush3.msk.msra.mxu1 %vm518_vm1, %v1693_v55  ;;  %v3732_v6 = vrot.slane %v645_v36, %v3415_v14  ;;  %v2192_v55 = vld [vmem:[#allocation2 + $0xf0] sm:$0xff]  ;;  %v2193_v21 = vld [vmem:[#allocation2 + $0xf8] sm:$0xff] }
  0x4b   :  { %v491_v13 = vcombine.low %v483_v46, %v490_v52  ;;  %v1721_v53 = vcombine.low %v3545_v59, %v3538_v43  ;;  %3289 = vmatprep.subr.bf16.mxu1 %v3372_v0  ;;  %v1720_v15 = vrot.slane %v1713_v9, %v3415_v14  ;;  %v693_v12 = vcombine.low %v3456_v57, %v3506_v30  ;;  %v2195_v9 = vld [vmem:[#allocation2 + $0x108] sm:$0xff] }
  0x4c   :  { %3181 = vmatmul.mubr.msk.f32.gmra.mrb[6].mxu1 %vm507_vm2, %v1276_v54  ;;  %v1291_v1 = vrot.slane %v3723_v56, %v3415_v14  ;;  %v506_v43 = vrot.slane %v3726_v58, %v3415_v14  ;;  %v694_v59 = vcombine.low %v3512_v35, %v3515_v38  ;;  %v1712_v19 = vcombine.low %v1704_v62, %v1711_v51  ;;  %v2190_v38 = vld [vmem:[#allocation2 + $0xe0] sm:$0xff] }
  0x4d   :  { %3123 = vmatmul.mubr.msk.f32.gmra.mrb[6].mxu0 %vm507_vm2, %v491_v13  ;;  %3183 = vmatprep.mubr.msk.f32.mxu1 %vm3373_vm0, %v3374_v2  ;;  %v1722_v26 = vcombine.low %v3550_v3, %v1720_v15  ;;  %v3023_v57 = vcombine.high %v3492_v20, %v3584_v31  ;;  %v221_v30 = vcombine.high %v3571_v25, %v3571_v25  ;;  %v2191_v3 = vld [vmem:[#allocation2 + $0xe8] sm:$0xff] }
  0x4e   :  { %3125 = vmatprep.mubr.msk.f32.mxu0 %vm3373_vm0, %v3374_v2  ;;  %v660_v32 = vcombine.low %v652_v5, %v3732_v6  ;;  %v1729_v22 = vrot.slane %v1721_v53, %v3415_v14  ;;  %v1747_v33 = vcombine.low %v3617_v7, %v3670_v29  ;;  %v710_v35 = vcombine.low %v3486_v16, %v3571_v25 }
  0x4f   :  { %v1736_v34 = vrot.slane %v1722_v26, %v3415_v14  ;;  %v3766_v41 = vrot.slane %v693_v12, %v3415_v14  ;;  %v1745_v40 = vrot.slane %v3023_v57, %v3415_v14  ;;  %v711_v36 = vcombine.low %v3584_v31, %v221_v30  ;;  %v2196_v30 = vld [vmem:[#allocation2 + $0x110] sm:$0x3] }
  0x50   :  { %3184 = vmatmul.mubr.msk.f32.gmra.mrb[8].mxu1 %vm507_vm2, %v1291_v1  ;;  %v3774_v25 = vrot.slane %v694_v59, %v3415_v14  ;;  %v720_v7 = vrot.slane %v710_v35, %v3415_v14  ;;  %v743_v29 = vcombine.low %v3621_v8, %v3610_v60  ;;  %v1763_v45 = vcombine.low %v3673_v23, %v3680_v11 }
  0x51   :  { %3126 = vmatmul.mubr.msk.f32.gmra.mrb[8].mxu0 %vm507_vm2, %v506_v43  ;;  %3200 = vmatprep.mubr.msk.f32.mxu1 %vm3373_vm0, %v3374_v2  ;;  %v1746_v44 = vcombine.low %v1745_v40, %v3614_v4  ;;  %v727_v31 = vrot.slane %v711_v36, %v3415_v14  ;;  %v3281_v46 = vpack.c.bf16 %v2191_v3, %v2190_v38 }
  0x52   :  { %3142 = vmatprep.mubr.msk.f32.mxu0 %vm3373_vm0, %v3374_v2  ;;  %v1761_v48 = vrot.slane %v1747_v33, %v3415_v14  ;;  %v1764_v49 = vcombine.low %v3687_v27, %v3726_v58  ;;  %v791_v8 = vcombine.low %v3632_v18, %v3655_v50  ;;  %v1737_v61 = vcombine.low %v1729_v22, %v1736_v34  ;;  %v2194_v58 = vld [vmem:[#allocation2 + $0x100] sm:$0xff] }
  0x53   :  { %v1754_v4 = vrot.slane %v1746_v44, %v3415_v14  ;;  %v742_v62 = vcombine.low %v720_v7, %v727_v31  ;;  %v792_v23 = vcombine.low %v3665_v17, %v3661_v63  ;;  %v709_v11 = vcombine.low %v3766_v41, %v3774_v25 }
  0x54   :  { %3201 = vmatmul.mubr.msk.f32.vlgmr.msra.gmra.mrb[10].mxu1 %vm507_vm2, %v1712_v19  ;;  %v757_v27 = vrot.slane %v743_v29, %v3415_v14  ;;  %v3284_v18 = vpack.c.bf16 %v2193_v21, %v2192_v55  ;;  %v1771_v51 = vrot.slane %v1763_v45, %v3415_v14  ;;  %v1778_v63 = vrot.slane %v1764_v49, %v3415_v14 }
  0x55   :  { %3143 = vmatmul.mubr.msk.f32.vlgmr.msra.gmra.mrb[0].mxu0 %vm507_vm2, %v660_v32  ;;  %3203 = vmatprep.mubr.msk.f32.mxu1 %vm3373_vm0, %v3374_v2  ;;  %v750_v50 = vrot.slane %v742_v62, %v3415_v14  ;;  %v3807_v17 = vrot.slane %v791_v8, %v3415_v14  ;;  %v3024_v52 = vcombine.high %v3652_v47, %v3698_v42 }
  0x56   :  { %3282 = vmatpush3.bf16.msra.mxu0 %v3281_v46  ;;  %3145 = vmatprep.mubr.msk.f32.mxu0 %vm3373_vm0, %v3374_v2  ;;  %v1762_v54 = vcombine.low %v1754_v4, %v1761_v48  ;;  %v806_v5 = vrot.slane %v792_v23, %v3415_v14  ;;  %v2212_v13 = vcombine.high %v3626_v10, %v3626_v10 }
  0x57   :  { %3283 = vmatprep.subr.bf16.mxu0 %v3372_v0  ;;  %3293 = vmatpush3.bf16.msra.mxu1 %v3281_v46  ;;  %v758_v53 = vcombine.low %v750_v50, %v757_v27  ;;  %v3031_v47 = vcombine.high %v3486_v16, %v3492_v20  ;;  %v2197_v1 = vcombine.high %v3436_v37, %v3436_v37 }
  0x58   :  { %3204 = vmatmul.mubr.msk.f32.gmra.mrb[12].mxu1 %vm507_vm2, %v1737_v61  ;;  %3290 = vmatprep.subr.bf16.mxu1 %v3372_v0  ;;  %v2262_v15 = vcombine.low %v3677_v24, %v3723_v56  ;;  %v2219_v10 = vrot.slane %v2212_v13, %v3415_v14  ;;  %v1779_v12 = vcombine.low %v1771_v51, %v1778_v63 }
  0x59   :  { %3146 = vmatmul.mubr.msk.f32.gmra.mrb[2].mxu0 %vm507_vm2, %v709_v11  ;;  %3206 = vmatprep.mubr.msk.f32.mxu1 %vm3373_vm0, %v3374_v2  ;;  %v3287_v43 = vpack.c.bf16 %v2195_v9, %v2194_v58  ;;  %v2204_v59 = vrot.slane %v2197_v1, %v3415_v14  ;;  %v1787_v37 = vrot.slane %v3024_v52, %v3415_v14 }
  0x5a   :  { %3285 = vmatpush3.bf16.msra.mxu0 %v3284_v18  ;;  %3148 = vmatprep.mubr.msk.f32.mxu0 %vm3373_vm0, %v3374_v2  ;;  %v1695_v16 = vcombine.high %v3698_v42, %v3698_v42  ;;  %v2226_v20 = vrot.slane %v2219_v10, %v3415_v14  ;;  %v807_v56 = vcombine.low %v3807_v17, %v806_v5 }
  0x5b   :  { %3294 = vmatpush3.bf16.msra.mxu1 %v3284_v18  ;;  %3286 = vmatprep.subr.bf16.mxu0 %v3372_v0  ;;  %v2235_v19 = vrot.slane %v3031_v47, %v3415_v14  ;;  %v2211_v26 = vrot.slane %v2204_v59, %v3415_v14  ;;  %v2269_v42 = vrot.slane %v2262_v15, %v3415_v14 }
  0x5c   :  { %3207 = vmatmul.mubr.msk.f32.gmra.mrb[14].mxu1 %vm507_vm2, %v1762_v54  ;;  %3291 = vmatprep.subr.bf16.mxu1 %v3372_v0  ;;  %v1794_v57 = vrot.slane %v1787_v37, %v3415_v14  ;;  %v2271_v32 = vcombine.low %v1695_v16, %v2226_v20  ;;  %v822_v22 = vrot.slane %v3677_v24, %v3415_v14 }
  0x5d   :  { %3149 = vmatmul.mubr.msk.f32.gmra.mrb[4].mxu0 %vm507_vm2, %v758_v53  ;;  %3209 = vmatprep.mubr.msk.f32.mxu1 %vm3373_vm0, %v3374_v2  ;;  %v2245_v0 = vcombine.low %v2211_v26, %v3577_v28  ;;  %v2236_v28 = vcombine.low %v3518_v39, %v2235_v19  ;;  %v2270_v35 = vcombine.low %v806_v5, %v2269_v42 }
  0x5e   :  { %3288 = vmatpush3.bf16.msra.mxu0 %v3287_v43  ;;  %3151 = vmatprep.mubr.msk.f32.mxu0 %vm3373_vm0, %v3374_v2  ;;  %v2278_v38 = vrot.slane %v2271_v32, %v3415_v14  ;;  %v2227_v3 = vcombine.low %v3732_v6, %v3766_v41 }
  0x5f   :  { %3295 = vmatpush3.bf16.msra.mxu1 %v3287_v43  ;;  %3227 = vmatprep.subr.mxu0 %v3374_v2  ;;  %v2252_v33 = vrot.slane %v2245_v0, %v3415_v14  ;;  %v2243_v39 = vrot.slane %v2236_v28, %v3415_v14 }
  0x60   :  { %3210 = vmatmul.mubr.msk.f32.gmra.mrb[16].mxu1 %vm507_vm2, %v1779_v12  ;;  %3292 = vmatprep.subr.mxu1 %v3374_v2  ;;  %v2285_v34 = vrot.slane %v2278_v38, %v3415_v14 }
  0x61   :  { %3152 = vmatmul.mubr.msk.f32.gmra.mrb[6].mxu0 %vm507_vm2, %v807_v56  ;;  %3212 = vmatprep.mubr.msk.f32.mxu1 %vm3373_vm0, %v3374_v2  ;;  %v2253_v24 = vcombine.low %v2252_v33, %v3610_v60  ;;  %v2244_v6 = vcombine.low %v3774_v25, %v2243_v39 }
  0x62   :  { %3154 = vmatprep.mubr.msk.f32.mxu0 %vm3373_vm0, %v3374_v2  ;;  %3228 = vmatpush3.msk.msra.mxu0 %vm518_vm1, %v2196_v30 }
  0x63   :  { %3296 = vmatpush3.msk.msra.mxu1 %vm518_vm1, %v2196_v30  ;;  %v2260_v41 = vrot.slane %v2253_v24, %v3415_v14 }
  0x64   :  { %3213 = vmatmul.mubr.msk.f32.gmra.mrb[18].mxu1 %vm507_vm2, %v1794_v57 }
  0x65   :  { %3155 = vmatmul.mubr.msk.f32.gmra.mrb[8].mxu0 %vm507_vm2, %v822_v22  ;;  %3238 = vmatprep.mubr.msk.f32.mxu1 %vm3373_vm0, %v3374_v2  ;;  %v2261_v60 = vcombine.low %v2260_v41, %v3807_v17 }
  0x66   :  { %3229 = vmatprep.mubr.msk.f32.mxu0 %vm3373_vm0, %v3374_v2 }
  0x68   :  { %3239 = vmatmul.mubr.msk.f32.vlgmr.msra.gmra.mrb[20].mxu1 %vm507_vm2, %v2270_v35 }
  0x69   :  { %3230 = vmatmul.mubr.msk.f32.vlgmr.msra.gmra.mrb[10].mxu0 %vm507_vm2, %v2227_v3  ;;  %3241 = vmatprep.mubr.msk.f32.mxu1 %vm3373_vm0, %v3374_v2 }
  0x6a   :  { %3232 = vmatprep.mubr.msk.f32.mxu0 %vm3373_vm0, %v3374_v2 }
  0x6c   :  { %3242 = vmatmul.mubr.msk.f32.gmra.mrb[22].mxu1 %vm507_vm2, %v2285_v34 }
  0x6d   :  { %3233 = vmatmul.mubr.msk.f32.gmra.mrb[12].mxu0 %vm507_vm2, %v2244_v6 }
  0x6e   :  { %3235 = vmatprep.mubr.msk.f32.mxu0 %vm3373_vm0, %v3374_v2 }
  0x71   :  { %3236 = vmatmul.mubr.msk.f32.gmra.mrb[14].mxu0 %vm507_vm2, %v2261_v60 }
  0xff   :  { %v1371_v40 = vpop.f32.mrb[0].mxu1 }
 0x100   :  { %v3173_v36 = vpop.f32.mrb[1].mxu1  ;;  %v1400_v29 = vcombine.high %v1371_v40, %v1371_v40  ;;  %v1407_v31 = vrot.slane %v1371_v40, %v3415_v14 }
 0x102   :  { %v1414_v46 = vrot.slane %v1400_v29, %v3415_v14  ;;  %v1415_v2 = vcombine.high %v1407_v31, %v1407_v31  ;;  %v3894_v62 = vrot.slane %v1407_v31, %v3415_v14 }
 0x104   :  { %v1416_v4 = vcombine.high %v1414_v46, %v1414_v46  ;;  %v3897_v23 = vrot.slane %v1414_v46, %v3415_v14  ;;  %v3900_v18 = vrot.slane %v1415_v2, %v3415_v14  ;;  %v1445_v52 = vcombine.high %v3894_v62, %v3894_v62 }
 0x106   :  { %v1376_v7 = vpop.f32.mrb[2].mxu1  ;;  %v3903_v17 = vrot.slane %v1416_v4, %v3415_v14  ;;  %v1446_v5 = vcombine.high %v3897_v23, %v3897_v23  ;;  %v1447_v43 = vcombine.high %v3900_v18, %v3900_v18 }
 0x107   :  { %v3176_v25 = vpop.f32.mrb[3].mxu1  ;;  %v1449_v44 = vcombine.high %v1376_v7, %v1376_v7  ;;  %v1456_v48 = vrot.slane %v1376_v7, %v3415_v14 }
 0x108   :  { %v1448_v56 = vcombine.high %v3903_v17, %v3903_v17 }
 0x109   :  { %v1463_v49 = vrot.slane %v1449_v44, %v3415_v14  ;;  %v1464_v11 = vcombine.high %v1456_v48, %v1456_v48  ;;  %v3911_v13 = vrot.slane %v1456_v48, %v3415_v14 }
 0x10b   :  { %v1465_v27 = vcombine.high %v1463_v49, %v1463_v49  ;;  %v3914_v53 = vrot.slane %v1463_v49, %v3415_v14  ;;  %v3917_v47 = vrot.slane %v1464_v11, %v3415_v14  ;;  %v1494_v57 = vcombine.high %v3911_v13, %v3911_v13 }
 0x10d   :  { %v3920_v1 = vrot.slane %v1465_v27, %v3415_v14  ;;  %v1495_v30 = vcombine.high %v3914_v53, %v3914_v53  ;;  %v1496_v28 = vcombine.high %v3917_v47, %v3917_v47 }
 0x10f   :  { %v1497_v33 = vcombine.high %v3920_v1, %v3920_v1 }
 0x117   :  { %v1381_v45 = vpop.f32.mrb[4].mxu1 }
 0x118   :  { %v1498_v55 = vcombine.high %v1381_v45, %v1381_v45  ;;  %v3179_v21 = vpop.f32.mrb[5].mxu1  ;;  %v1505_v8 = vrot.slane %v1381_v45, %v3415_v14 }
 0x11a   :  { %v1512_v61 = vrot.slane %v1498_v55, %v3415_v14  ;;  %v1513_v50 = vcombine.high %v1505_v8, %v1505_v8  ;;  %v3923_v15 = vrot.slane %v1505_v8, %v3415_v14 }
 0x11c   :  { %v1514_v51 = vcombine.high %v1512_v61, %v1512_v61  ;;  %v3929_v59 = vrot.slane %v1512_v61, %v3415_v14  ;;  %v3932_v37 = vrot.slane %v1513_v50, %v3415_v14  ;;  %v1543_v35 = vcombine.high %v3923_v15, %v3923_v15 }
 0x11e   :  { %v3935_v16 = vrot.slane %v1514_v51, %v3415_v14  ;;  %v1544_v3 = vcombine.high %v3929_v59, %v3929_v59  ;;  %v1545_v39 = vcombine.high %v3932_v37, %v3932_v37 }
 0x11f   :  { %v1386_v63 = vpop.f32.mrb[6].mxu1 }
 0x120   :  { %v1547_v54 = vcombine.high %v1386_v63, %v1386_v63  ;;  %v1554_v58 = vrot.slane %v1386_v63, %v3415_v14  ;;  %v3182_v9 = vpop.f32.mrb[7].mxu1  ;;  %v1546_v24 = vcombine.high %v3935_v16, %v3935_v16 }
 0x122   :  { %v1561_v10 = vrot.slane %v1547_v54, %v3415_v14  ;;  %v1562_v12 = vcombine.high %v1554_v58, %v1554_v58  ;;  %v3940_v26 = vrot.slane %v1554_v58, %v3415_v14 }
 0x123   :  { %v1391_v20 = vpop.f32.mrb[8].mxu1 }
 0x124   :  { %v1563_v19 = vcombine.high %v1561_v10, %v1561_v10  ;;  %v3943_v0 = vrot.slane %v1561_v10, %v3415_v14  ;;  %v3185_v42 = vpop.f32.mrb[9].mxu1  ;;  %v3950_v32 = vrot.slane %v1562_v12, %v3415_v14  ;;  %v3953_v22 = vrot.slane %v1391_v20, %v3415_v14 }
 0x125   :  { %v1592_v41 = vcombine.high %v3940_v26, %v3940_v26 }
 0x126   :  { %v3962_v38 = vrot.slane %v1563_v19, %v3415_v14  ;;  %v1603_v34 = vcombine.high %v3953_v22, %v3953_v22  ;;  %v1593_v60 = vcombine.high %v3943_v0, %v3943_v0  ;;  %v1594_v29 = vcombine.high %v3950_v32, %v3950_v32 }
 0x127   :  { %v1874_v6 = vpop.f32.mrb[10].mxu1 }
 0x128   :  { %v902_v40 = vpop.f32.mrb[0].mxu0  ;;  %v1903_v36 = vcombine.high %v1874_v6, %v1874_v6  ;;  %v1910_v7 = vrot.slane %v1874_v6, %v3415_v14  ;;  %v3202_v25 = vpop.f32.mrb[11].mxu1  ;;  %v3989_v4 = vrot.slane %v1603_v34, %v3415_v14 }
 0x129   :  { %v931_v44 = vcombine.high %v902_v40, %v902_v40  ;;  %v938_v31 = vrot.slane %v902_v40, %v3415_v14  ;;  %v3144_v46 = vpop.f32.mrb[1].mxu0 }
 0x12a   :  { %v1917_v21 = vrot.slane %v1903_v36, %v3415_v14  ;;  %v1918_v48 = vcombine.high %v1910_v7, %v1910_v7  ;;  %v1926_v49 = vrot.slane %v1910_v7, %v3415_v14 }
 0x12b   :  { %v945_v2 = vrot.slane %v931_v44, %v3415_v14  ;;  %v946_v8 = vcombine.high %v938_v31, %v938_v31  ;;  %v954_v61 = vrot.slane %v938_v31, %v3415_v14  ;;  %v1879_v11 = vpop.f32.mrb[12].mxu1 }
 0x12c   :  { %v1919_v27 = vcombine.high %v1917_v21, %v1917_v21  ;;  %v1933_v50 = vrot.slane %v1917_v21, %v3415_v14  ;;  %v1940_v51 = vrot.slane %v1918_v48, %v3415_v14  ;;  %v1948_v63 = vcombine.high %v1926_v49, %v1926_v49  ;;  %v907_v54 = vpop.f32.mrb[2].mxu0  ;;  %v3205_v58 = vpop.f32.mrb[13].mxu1 }
 0x12d   :  { %v947_v9 = vcombine.high %v945_v2, %v945_v2  ;;  %v961_v10 = vrot.slane %v945_v2, %v3415_v14  ;;  %v968_v12 = vrot.slane %v946_v8, %v3415_v14  ;;  %v976_v20 = vcombine.high %v954_v61, %v954_v61  ;;  %v3147_v19 = vpop.f32.mrb[3].mxu0 }
 0x12e   :  { %v1652_v42 = vadd.f32 %v3894_v62, %v954_v61  ;;  %v1947_v34 = vrot.slane %v1919_v27, %v3415_v14  ;;  %v1949_v6 = vcombine.high %v1933_v50, %v1933_v50  ;;  %v1950_v40 = vcombine.high %v1940_v51, %v1940_v51 }
 0x12f   :  { %v975_v36 = vrot.slane %v947_v9, %v3415_v14  ;;  %v977_v7 = vcombine.high %v961_v10, %v961_v10  ;;  %v978_v25 = vcombine.high %v968_v12, %v968_v12  ;;  %v1653_v44 = vadd.f32 %v3900_v18, %v968_v12  ;;  %v3999_v31 = vpop.f32.mrb[14].mxu1 }
 0x130   :  { %v1654_v46 = vadd.f32 %v1445_v52, %v976_v20  ;;  %v1656_v21 = vadd.f32 %v3897_v23, %v961_v10  ;;  %v1951_v48 = vcombine.high %v1947_v34, %v1947_v34  ;;  %v4005_v2 = vadd.f32 %v1926_v49, %v1652_v42  ;;  %v912_v8 = vpop.f32.mrb[4].mxu0  ;;  %v3208_v61 = vpop.f32.mrb[15].mxu1 }
 0x131   :  { %v979_v27 = vcombine.high %v975_v36, %v975_v36  ;;  %v1655_v58 = vadd.f32 %v1447_v43, %v978_v25  ;;  %v1657_v9 = vadd.f32 %v3903_v17, %v975_v36  ;;  %v1658_v12 = vadd.f32 %v1446_v5, %v977_v7  ;;  %v3150_v62 = vpop.f32.mrb[5].mxu0 }
 0x132   :  { %v4014_v52 = vadd.f32 %v1940_v51, %v1653_v44  ;;  %v4016_v10 = vadd.f32 %v1948_v63, %v1654_v46  ;;  %v4018_v49 = vadd.f32 %v1933_v50, %v1656_v21  ;;  %v980_v20 = vcombine.high %v907_v54, %v907_v54 }
 0x133   :  { %v1659_v19 = vadd.f32 %v1448_v56, %v979_v27  ;;  %v4023_v18 = vadd.f32 %v1950_v40, %v1655_v58  ;;  %v4025_v43 = vadd.f32 %v1947_v34, %v1657_v9  ;;  %v4027_v42 = vadd.f32 %v1949_v6, %v1658_v12  ;;  %v4029_v23 = vpop.f32.mrb[16].mxu1 }
 0x134   :  { %v987_v5 = vrot.slane %v907_v54, %v3415_v14  ;;  %v994_v51 = vrot.slane %v980_v20, %v3415_v14  ;;  %v1952_v63 = vcombine.high %v1879_v11, %v1879_v11  ;;  %v1959_v50 = vrot.slane %v1879_v11, %v3415_v14  ;;  %v4034_v36 = vpop.f32.mrb[6].mxu0  ;;  %v3211_v7 = vpop.f32.mrb[17].mxu1 }
 0x135   :  { %v4036_v17 = vadd.f32 %v1951_v48, %v1659_v19  ;;  %v1029_v56 = vcombine.high %v912_v8, %v912_v8  ;;  %v1036_v34 = vrot.slane %v912_v8, %v3415_v14  ;;  %v2001_v6 = vcombine.high %v3999_v31, %v3999_v31  ;;  %v3153_v40 = vpop.f32.mrb[7].mxu0 }
 0x136   :  { %v995_v25 = vcombine.high %v987_v5, %v987_v5  ;;  %v996_v44 = vcombine.high %v994_v51, %v994_v51  ;;  %v1003_v54 = vrot.slane %v987_v5, %v3415_v14  ;;  %v1010_v46 = vrot.slane %v994_v51, %v3415_v14 }
 0x137   :  { %v1966_v11 = vrot.slane %v1952_v63, %v3415_v14  ;;  %v1967_v21 = vcombine.high %v1959_v50, %v1959_v50  ;;  %v1975_v61 = vrot.slane %v1959_v50, %v3415_v14  ;;  %v1043_v48 = vrot.slane %v1029_v56, %v3415_v14  ;;  %v4046_v27 = vpop.f32.mrb[18].mxu1 }
 0x138   :  { %v1017_v8 = vrot.slane %v995_v25, %v3415_v14  ;;  %v1024_v58 = vrot.slane %v996_v44, %v3415_v14  ;;  %v1025_v9 = vcombine.high %v1003_v54, %v1003_v54  ;;  %v1026_v12 = vcombine.high %v1010_v46, %v1010_v46  ;;  %v4050_v62 = vpop.f32.mrb[8].mxu0  ;;  %v3214_v20 = vpop.f32.mrb[19].mxu1 }
 0x139   :  { %v1660_v19 = vadd.f32 %v3911_v13, %v1003_v54  ;;  %v1664_v5 = vadd.f32 %v3914_v53, %v1010_v46  ;;  %v1968_v51 = vcombine.high %v1966_v11, %v1966_v11  ;;  %v1982_v63 = vrot.slane %v1966_v11, %v3415_v14  ;;  %v3156_v50 = vpop.f32.mrb[9].mxu0 }
 0x13a   :  { %v1027_v7 = vcombine.high %v1017_v8, %v1017_v8  ;;  %v1028_v56 = vcombine.high %v1024_v58, %v1024_v58  ;;  %v1661_v40 = vadd.f32 %v3917_v47, %v1017_v8  ;;  %v1662_v25 = vadd.f32 %v1494_v57, %v1025_v9 }
 0x13b   :  { %v1665_v44 = vadd.f32 %v3920_v1, %v1024_v58  ;;  %v1666_v54 = vadd.f32 %v1495_v30, %v1026_v12  ;;  %v1989_v46 = vrot.slane %v1967_v21, %v3415_v14  ;;  %v1996_v20 = vrot.slane %v1968_v51, %v3415_v14  ;;  %v4065_v11 = vpop.f32.mrb[20].mxu1 }
 0x13c   :  { %v1663_v8 = vadd.f32 %v1496_v28, %v1027_v7  ;;  %v1667_v13 = vadd.f32 %v1497_v33, %v1028_v56  ;;  %v1997_v57 = vcombine.high %v1975_v61, %v1975_v61  ;;  %v1998_v58 = vcombine.high %v1982_v63, %v1982_v63  ;;  %v4073_v9 = vpop.f32.mrb[10].mxu0  ;;  %v3240_v53 = vpop.f32.mrb[21].mxu1 }
 0x13d   :  { %v1999_v30 = vcombine.high %v1989_v46, %v1989_v46  ;;  %v2000_v12 = vcombine.high %v1996_v20, %v1996_v20  ;;  %v4075_v21 = vadd.f32 %v1975_v61, %v1660_v19  ;;  %v4077_v51 = vadd.f32 %v1989_v46, %v1661_v40  ;;  %v3231_v50 = vpop.f32.mrb[11].mxu0 }
 0x13e   :  { %v4079_v45 = vadd.f32 %v1997_v57, %v1662_v25  ;;  %v4081_v47 = vadd.f32 %v1982_v63, %v1664_v5  ;;  %v4083_v28 = vadd.f32 %v1996_v20, %v1665_v44  ;;  %v4085_v1 = vadd.f32 %v1998_v58, %v1666_v54 }
 0x13f   :  { %v4087_v33 = vadd.f32 %v1999_v30, %v1663_v8  ;;  %v4089_v7 = vadd.f32 %v2000_v12, %v1667_v13  ;;  %v1044_v56 = vcombine.high %v1036_v34, %v1036_v34  ;;  %v1045_v53 = vcombine.high %v1043_v48, %v1043_v48  ;;  %v4091_v55 = vpop.f32.mrb[22].mxu1 }
 0x140   :  { %v1052_v61 = vrot.slane %v1036_v34, %v3415_v14  ;;  %v1059_v19 = vrot.slane %v1043_v48, %v3415_v14  ;;  %v2008_v5 = vrot.slane %v3999_v31, %v3415_v14  ;;  %v2015_v63 = vrot.slane %v2001_v6, %v3415_v14  ;;  %v4098_v40 = vpop.f32.mrb[12].mxu0  ;;  %v3243_v25 = vpop.f32.mrb[23].mxu1 }
 0x141   :  { %v1066_v44 = vrot.slane %v1044_v56, %v3415_v14  ;;  %v1073_v54 = vrot.slane %v1045_v53, %v3415_v14  ;;  %v1078_v46 = vcombine.high %v4034_v36, %v4034_v36  ;;  %v1085_v34 = vrot.slane %v4034_v36, %v3415_v14  ;;  %v3234_v20 = vpop.f32.mrb[13].mxu0 }
 0x142   :  { %v1074_v48 = vcombine.high %v1052_v61, %v1052_v61  ;;  %v1075_v8 = vcombine.high %v1059_v19, %v1059_v19  ;;  %v1668_v31 = vadd.f32 %v3923_v15, %v1052_v61  ;;  %v1672_v6 = vadd.f32 %v3929_v59, %v1059_v19 }
 0x143   :  { %v1076_v13 = vcombine.high %v1066_v44, %v1066_v44  ;;  %v1077_v57 = vcombine.high %v1073_v54, %v1073_v54  ;;  %v1669_v58 = vadd.f32 %v3932_v37, %v1066_v44  ;;  %v1673_v30 = vadd.f32 %v3935_v16, %v1073_v54 }
 0x144   :  { %v1670_v12 = vadd.f32 %v1543_v35, %v1074_v48  ;;  %v1674_v36 = vadd.f32 %v1544_v3, %v1075_v8  ;;  %v2016_v50 = vcombine.high %v2008_v5, %v2008_v5  ;;  %v2017_v56 = vcombine.high %v2015_v63, %v2015_v63  ;;  %v4116_v53 = vpop.f32.mrb[14].mxu0 }
 0x145   :  { %v1671_v61 = vadd.f32 %v1545_v39, %v1076_v13  ;;  %v1675_v19 = vadd.f32 %v1546_v24, %v1077_v57  ;;  %v2024_v25 = vrot.slane %v2008_v5, %v3415_v14  ;;  %v2031_v15 = vrot.slane %v2015_v63, %v3415_v14  ;;  %v3237_v35 = vpop.f32.mrb[15].mxu0 }
 0x146   :  { %v2038_v59 = vrot.slane %v2016_v50, %v3415_v14  ;;  %v2045_v3 = vrot.slane %v2017_v56, %v3415_v14  ;;  %v1092_v44 = vrot.slane %v1078_v46, %v3415_v14  ;;  %v1093_v54 = vcombine.high %v1085_v34, %v1085_v34 }
 0x147   :  { %v2046_v20 = vcombine.high %v2024_v25, %v2024_v25  ;;  %v2047_v48 = vcombine.high %v2031_v15, %v2031_v15  ;;  %v4129_v37 = vadd.f32 %v2024_v25, %v1668_v31  ;;  %v4131_v39 = vadd.f32 %v2031_v15, %v1672_v6 }
 0x148   :  { %v2048_v16 = vcombine.high %v2038_v59, %v2038_v59  ;;  %v2049_v24 = vcombine.high %v2045_v3, %v2045_v3  ;;  %v4133_v8 = vadd.f32 %v2038_v59, %v1669_v58  ;;  %v4135_v5 = vadd.f32 %v2045_v3, %v1673_v30 }
 0x149   :  { %v4137_v63 = vadd.f32 %v2046_v20, %v1670_v12  ;;  %v4139_v13 = vadd.f32 %v2047_v48, %v1674_v36  ;;  %v1094_v57 = vcombine.high %v1092_v44, %v1092_v44  ;;  %v1101_v46 = vrot.slane %v1085_v34, %v3415_v14 }
 0x14a   :  { %v4142_v50 = vadd.f32 %v2048_v16, %v1671_v61  ;;  %v4144_v56 = vadd.f32 %v2049_v24, %v1675_v19  ;;  %v1108_v31 = vrot.slane %v1092_v44, %v3415_v14  ;;  %v1115_v6 = vrot.slane %v1093_v54, %v3415_v14 }
 0x14b   :  { %v1122_v58 = vrot.slane %v1094_v57, %v3415_v14  ;;  %v1123_v25 = vcombine.high %v1101_v46, %v1101_v46  ;;  %v1676_v30 = vadd.f32 %v3940_v26, %v1101_v46  ;;  %v2050_v12 = vcombine.high %v4029_v23, %v4029_v23 }
 0x14c   :  { %v1124_v36 = vcombine.high %v1108_v31, %v1108_v31  ;;  %v1125_v15 = vcombine.high %v1115_v6, %v1115_v6  ;;  %v1677_v34 = vadd.f32 %v3950_v32, %v1115_v6  ;;  %v1680_v61 = vadd.f32 %v3943_v0, %v1108_v31 }
 0x14d   :  { %v1126_v19 = vcombine.high %v1122_v58, %v1122_v58  ;;  %v1678_v35 = vadd.f32 %v1592_v41, %v1123_v25  ;;  %v1681_v59 = vadd.f32 %v3962_v38, %v1122_v58  ;;  %v2057_v3 = vrot.slane %v4029_v23, %v3415_v14 }
 0x14e   :  { %v1679_v44 = vadd.f32 %v1594_v29, %v1125_v15  ;;  %v1682_v54 = vadd.f32 %v1593_v60, %v1124_v36  ;;  %v2064_v20 = vrot.slane %v2050_v12, %v3415_v14  ;;  %v1133_v48 = vrot.slane %v4050_v62, %v3415_v14 }
 0x14f   :  { %v4320_v26 = vcombine.high %v3962_v38, %v3962_v38  ;;  %v2065_v16 = vcombine.high %v2057_v3, %v2057_v3  ;;  %v2073_v23 = vrot.slane %v2057_v3, %v3415_v14  ;;  %v2105_v32 = vrot.slane %v4046_v27, %v3415_v14 }
 0x150   :  { %v2066_v29 = vcombine.high %v2064_v20, %v2064_v20  ;;  %v2080_v24 = vrot.slane %v2064_v20, %v3415_v14  ;;  %v1134_v0 = vcombine.high %v1133_v48, %v1133_v48  ;;  %v1141_v60 = vrot.slane %v1133_v48, %v3415_v14 }
 0x151   :  { %v1683_v41 = vadd.f32 %v4320_v26, %v1126_v19  ;;  %v2087_v57 = vrot.slane %v2065_v16, %v3415_v14  ;;  %v2095_v46 = vcombine.high %v2073_v23, %v2073_v23  ;;  %v2179_v62 = vadd.f32 %v2073_v23, %v1676_v30 }
 0x152   :  { %v2106_v31 = vcombine.high %v2105_v32, %v2105_v32  ;;  %v2094_v38 = vrot.slane %v2066_v29, %v3415_v14  ;;  %v2096_v6 = vcombine.high %v2080_v24, %v2080_v24  ;;  %v2183_v58 = vadd.f32 %v2080_v24, %v1680_v61 }
 0x153   :  { %v1148_v25 = vrot.slane %v1134_v0, %v3415_v14  ;;  %v2097_v12 = vcombine.high %v2087_v57, %v2087_v57  ;;  %v2180_v36 = vadd.f32 %v2087_v57, %v1677_v34  ;;  %v2181_v27 = vadd.f32 %v2095_v46, %v1678_v35 }
 0x154   :  { %v4321_v15 = vrot.slane %v3953_v22, %v3415_v14  ;;  %v2098_v3 = vcombine.high %v2094_v38, %v2094_v38  ;;  %v2184_v20 = vadd.f32 %v2094_v38, %v1681_v59  ;;  %v2185_v48 = vadd.f32 %v2096_v6, %v1682_v54 }
 0x155   :  { %v1685_v26 = vadd.f32 %v3989_v4, %v1148_v25  ;;  %v2182_v30 = vadd.f32 %v2097_v12, %v1679_v44  ;;  %v2113_v16 = vrot.slane %v2105_v32, %v3415_v14  ;;  %v2120_v23 = vrot.slane %v2106_v31, %v3415_v14 }
 0x156   :  { %v1684_v19 = vadd.f32 %v4321_v15, %v1141_v60  ;;  %v2541_v61 = vcombine.high %v4065_v11, %v4065_v11  ;;  %v2548_v34 = vrot.slane %v4065_v11, %v3415_v14  ;;  %v2394_v22 = vcombine.high %v4073_v9, %v4073_v9 }
 0x157   :  { %v2401_v35 = vrot.slane %v4073_v9, %v3415_v14  ;;  %v2186_v59 = vadd.f32 %v2098_v3, %v1683_v41  ;;  %v2188_v4 = vadd.f32 %v2120_v23, %v1685_v26  ;;  %v2596_v32 = vrot.slane %v4091_v55, %v3415_v14 }
 0x158   :  { %v2187_v54 = vadd.f32 %v2113_v16, %v1684_v19  ;;  %v2555_v44 = vrot.slane %v2541_v61, %v3415_v14  ;;  %v2556_v29 = vcombine.high %v2548_v34, %v2548_v34  ;;  %v2564_v24 = vrot.slane %v2548_v34, %v3415_v14 }
 0x159   :  { %v2408_v0 = vrot.slane %v2394_v22, %v3415_v14  ;;  %v2409_v11 = vcombine.high %v2401_v35, %v2401_v35  ;;  %v2417_v46 = vrot.slane %v2401_v35, %v3415_v14  ;;  %v2597_v9 = vcombine.high %v2596_v32, %v2596_v32 }
 0x15a   :  { %v2557_v60 = vcombine.high %v2555_v44, %v2555_v44  ;;  %v2571_v57 = vrot.slane %v2555_v44, %v3415_v14  ;;  %v2578_v41 = vrot.slane %v2556_v29, %v3415_v14  ;;  %v2586_v31 = vcombine.high %v2564_v24, %v2564_v24 }
 0x15b   :  { %v4202_v38 = vadd.f32 %v2564_v24, %v2179_v62  ;;  %v2410_v6 = vcombine.high %v2408_v0, %v2408_v0  ;;  %v2424_v15 = vrot.slane %v2408_v0, %v3415_v14  ;;  %v2431_v16 = vrot.slane %v2409_v11, %v3415_v14 }
 0x15c   :  { %v2585_v55 = vrot.slane %v2557_v60, %v3415_v14  ;;  %v2587_v25 = vcombine.high %v2571_v57, %v2571_v57  ;;  %v2674_v12 = vadd.f32 %v2571_v57, %v2183_v58  ;;  %v2588_v19 = vcombine.high %v2578_v41, %v2578_v41 }
 0x15d   :  { %4322 = vst [vmem:[#allocation8_spill] sm:$0xff] %v4202_v38  ;;  %v2671_v3 = vadd.f32 %v2578_v41, %v2180_v36  ;;  %v2672_v26 = vadd.f32 %v2586_v31, %v2181_v27  ;;  %v2438_v22 = vrot.slane %v2410_v6, %v3415_v14  ;;  %v2439_v44 = vcombine.high %v2417_v46, %v2417_v46 }
 0x15e   :  { %v2589_v23 = vcombine.high %v2585_v55, %v2585_v55  ;;  %v2675_v61 = vadd.f32 %v2585_v55, %v2184_v20  ;;  %v2676_v34 = vadd.f32 %v2587_v25, %v2185_v48  ;;  %v2673_v35 = vadd.f32 %v2588_v19, %v2182_v30 }
 0x15f   :  { %v2875_v62 = vcombine.low %v2671_v3, %v2672_v26  ;;  %v2440_v29 = vcombine.high %v2424_v15, %v2424_v15  ;;  %v2441_v60 = vcombine.high %v2431_v16, %v2431_v16  ;;  %v2442_v38 = vcombine.high %v2438_v22, %v2438_v22 }
 0x160   :  { %v2877_v24 = vcombine.low %v2675_v61, %v2676_v34  ;;  %v2646_v58 = vadd.f32 %v2417_v46, %v4005_v2  ;;  %v2876_v0 = vcombine.low %v2673_v35, %v2674_v12  ;;  %v2647_v27 = vadd.f32 %v2431_v16, %v4014_v52 }
 0x161   :  { %v2885_v36 = vrot.slane %v2875_v62, %v3415_v14  ;;  %v2648_v11 = vadd.f32 %v2439_v44, %v4016_v10  ;;  %v2649_v20 = vadd.f32 %v2441_v60, %v4023_v18  ;;  %v2650_v48 = vadd.f32 %v2424_v15, %v4018_v49 }
 0x162   :  { %v2651_v30 = vadd.f32 %v2438_v22, %v4025_v43  ;;  %v2652_v57 = vadd.f32 %v2440_v29, %v4027_v42  ;;  %v2892_v41 = vrot.slane %v2876_v0, %v3415_v14  ;;  %v2653_v31 = vadd.f32 %v2442_v38, %v4036_v17 }
 0x163   :  { %v2714_v2 = vcombine.low %v2646_v58, %v2647_v27  ;;  %v2604_v46 = vrot.slane %v2596_v32, %v3415_v14  ;;  %v2715_v6 = vcombine.low %v2648_v11, %v2649_v20  ;;  %v2611_v52 = vrot.slane %v2597_v9, %v3415_v14 }
 0x164   :  { %v2716_v55 = vcombine.low %v2650_v48, %v2651_v30  ;;  %v2677_v10 = vadd.f32 %v2589_v23, %v2186_v59  ;;  %v2907_v25 = vcombine.low %v2885_v36, %v2892_v41  ;;  %v2717_v18 = vcombine.low %v2652_v57, %v2653_v31 }
 0x165   :  { %v2678_v12 = vadd.f32 %v2604_v46, %v2187_v54  ;;  %v2724_v49 = vrot.slane %v2714_v2, %v3415_v14  ;;  %v2731_v43 = vrot.slane %v2715_v6, %v3415_v14  ;;  %v4222_v42 = vadd.f32 %v2611_v52, %v2188_v4 }
 0x166   :  { %v2738_v15 = vrot.slane %v2716_v55, %v3415_v14  ;;  %v2745_v17 = vrot.slane %v2717_v18, %v3415_v14  ;;  %v2443_v32 = vcombine.high %v4098_v40, %v4098_v40  ;;  %v2899_v59 = vrot.slane %v2877_v24, %v3415_v14 }
 0x167   :  { %v2878_v38 = vcombine.low %v2677_v10, %v2678_v12  ;;  %v2746_v19 = vcombine.low %v2724_v49, %v2731_v43  ;;  %v2450_v54 = vrot.slane %v4098_v40, %v3415_v14  ;;  %v4232_v9 = vrot.slane %v2907_v25, %v3415_v14 }
 0x168   :  { %v2747_v3 = vcombine.low %v2738_v15, %v2745_v17  ;;  %v2457_v26 = vrot.slane %v2443_v32, %v3415_v14  ;;  %v2492_v61 = vcombine.high %v4116_v53, %v4116_v53  ;;  %v2499_v34 = vrot.slane %v4116_v53, %v3415_v14 }
 0x169   :  { %v2906_v4 = vrot.slane %v2878_v38, %v3415_v14  ;;  %v2458_v16 = vcombine.high %v2450_v54, %v2450_v54  ;;  %v2466_v23 = vrot.slane %v2450_v54, %v3415_v14  ;;  %v4242_v22 = vrot.slane %v2746_v19, %v3415_v14 }
 0x16a   :  { %v2459_v35 = vcombine.high %v2457_v26, %v2457_v26  ;;  %v2473_v62 = vrot.slane %v2457_v26, %v3415_v14  ;;  %v4246_v44 = vrot.slane %v2747_v3, %v3415_v14  ;;  %v2506_v48 = vrot.slane %v2492_v61, %v3415_v14 }
 0x16b   :  { %v2908_v40 = vcombine.low %v2899_v59, %v2906_v4  ;;  %v2480_v29 = vrot.slane %v2458_v16, %v3415_v14  ;;  %v2488_v24 = vcombine.high %v2466_v23, %v2466_v23  ;;  %v2654_v60 = vadd.f32 %v2466_v23, %v4075_v21 }
 0x16c   :  { %v2487_v53 = vrot.slane %v2459_v35, %v3415_v14  ;;  %v2489_v0 = vcombine.high %v2473_v62, %v2473_v62  ;;  %v2658_v36 = vadd.f32 %v2473_v62, %v4081_v47  ;;  %v2507_v46 = vcombine.high %v2499_v34, %v2499_v34 }
 0x16d   :  { %v4251_v58 = vrot.slane %v2908_v40, %v3415_v14  ;;  %v2490_v27 = vcombine.high %v2480_v29, %v2480_v29  ;;  %v2655_v11 = vadd.f32 %v2480_v29, %v4077_v51  ;;  %v2656_v20 = vadd.f32 %v2488_v24, %v4079_v45 }
 0x16e   :  { %v2491_v57 = vcombine.high %v2487_v53, %v2487_v53  ;;  %v2659_v21 = vadd.f32 %v2487_v53, %v4083_v28  ;;  %v2660_v41 = vadd.f32 %v2489_v0, %v4085_v1  ;;  %v2508_v47 = vcombine.high %v2506_v48, %v2506_v48 }
 0x16f   :  { %v2923_v30 = vcombine.low %v4232_v9, %v4251_v58  ;;  %v2657_v31 = vadd.f32 %v2490_v27, %v4087_v33  ;;  %v2763_v2 = vcombine.low %v2654_v60, %v2655_v11  ;;  %v2515_v45 = vrot.slane %v2499_v34, %v3415_v14 }
 0x170   :  { %v2661_v6 = vadd.f32 %v2491_v57, %v4089_v7  ;;  %v2765_v51 = vcombine.low %v2658_v36, %v2659_v21  ;;  %v2522_v55 = vrot.slane %v2506_v48, %v3415_v14  ;;  %v2529_v25 = vrot.slane %v2507_v46, %v3415_v14 }
 0x171   :  { %v2764_v52 = vcombine.low %v2656_v20, %v2657_v31  ;;  %v2773_v10 = vrot.slane %v2763_v2, %v3415_v14  ;;  %v2536_v28 = vrot.slane %v2508_v47, %v3415_v14  ;;  %v2537_v18 = vcombine.high %v2515_v45, %v2515_v45 }
 0x172   :  { %v2766_v1 = vcombine.low %v2660_v41, %v2661_v6  ;;  %v2787_v33 = vrot.slane %v2765_v51, %v3415_v14  ;;  %v2538_v12 = vcombine.high %v2522_v55, %v2522_v55  ;;  %v2539_v7 = vcombine.high %v2529_v25, %v2529_v25 }
 0x173   :  { %v2780_v49 = vrot.slane %v2764_v52, %v3415_v14  ;;  %v2540_v43 = vcombine.high %v2536_v28, %v2536_v28  ;;  %v2662_v15 = vadd.f32 %v2515_v45, %v4129_v37  ;;  %v2663_v38 = vadd.f32 %v2529_v25, %v4133_v8 }
 0x174   :  { %v2794_v17 = vrot.slane %v2766_v1, %v3415_v14  ;;  %v2664_v32 = vadd.f32 %v2537_v18, %v4137_v63  ;;  %v2666_v19 = vadd.f32 %v2522_v55, %v4131_v39  ;;  %v2665_v54 = vadd.f32 %v2539_v7, %v4142_v50 }
 0x175   :  { %v2795_v59 = vcombine.low %v2773_v10, %v2780_v49  ;;  %v2667_v3 = vadd.f32 %v2536_v28, %v4135_v5  ;;  %v2668_v4 = vadd.f32 %v2538_v12, %v4139_v13  ;;  %v2669_v16 = vadd.f32 %v2540_v43, %v4144_v56  ;;  %v4323_v5 = vld [vmem:[#allocation8_spill] sm:$0xff] }
 0x176   :  { %v2796_v26 = vcombine.low %v2787_v33, %v2794_v17  ;;  %v2762_v37 = vcombine.low %v4242_v22, %v4246_v44  ;;  %v2818_v23 = vrot.slane %v2662_v15, %v3415_v14  ;;  %v2826_v8 = vcombine.low %v2663_v38, %v2664_v32 }
 0x177   :  { %v2827_v61 = vcombine.low %v2665_v54, %v2666_v19  ;;  %v2828_v63 = vcombine.low %v2667_v3, %v2668_v4  ;;  %v2803_v39 = vrot.slane %v2795_v59, %v3415_v14  ;;  %v2829_v40 = vcombine.low %v2669_v16, %v4323_v5 }
 0x178   :  { %v2810_v34 = vrot.slane %v2796_v26, %v3415_v14  ;;  %v2825_v50 = vrot.slane %v2818_v23, %v3415_v14  ;;  %v2930_v13 = vrot.slane %v4222_v42, %v3415_v14  ;;  %v2836_v56 = vrot.slane %v2826_v8, %v3415_v14 }
 0x179   :  { %v2843_v22 = vrot.slane %v2827_v61, %v3415_v14  ;;  %v2850_v62 = vrot.slane %v2828_v63, %v3415_v14  ;;  %v2857_v44 = vrot.slane %v2829_v40, %v3415_v14 }
 0x17a   :  { %v2811_v35 = vcombine.low %v2803_v39, %v2810_v34  ;;  %v2945_v29 = vsel %vm2944_vm3, %v2825_v50, -inf  ;;  %v2937_v0 = vrot.slane %v2930_v13, %v3415_v14 }
 0x17b   :  { %v2858_v24 = vcombine.low %v2836_v56, %v2843_v22  ;;  %v2946_v60 = vmax.f32 %v2762_v37, %v2945_v29  ;;  %v2859_v53 = vcombine.low %v2850_v62, %v2857_v44 }
 0x17c   :  { %v2954_v48 = vsel %vm2944_vm3, %v2937_v0, -inf }
 0x17d   :  { %v2947_v36 = vmax.f32 %v2946_v60, %v2811_v35  ;;  %v2866_v42 = vrot.slane %v2858_v24, %v3415_v14  ;;  %v2873_v27 = vrot.slane %v2859_v53, %v3415_v14  ;;  %v3038_v14 = vld [vmem:[%s4318_s2] ss:$0 sm:$0xff] }
 0x17f   :  { %v2948_v11 = vrot.slane %v2947_v36, 4  ;;  %v2874_v20 = vcombine.low %v2866_v42, %v2873_v27 }
 0x181   :  { %v2949_v57 = vmax.f32 %v2947_v36, %v2948_v11  ;;  %v2955_v21 = vmax.f32 %v2874_v20, %v2954_v48 }
 0x183   :  { %v2950_v41 = vrot.slane %v2949_v57, 2  ;;  %v2956_v31 = vmax.f32 %v2955_v21, %v2923_v30 }
 0x185   :  { %v2951_v2 = vmax.f32 %v2949_v57, %v2950_v41  ;;  %v2957_v46 = vrot.slane %v2956_v31, 4 }
 0x187   :  { %v2958_v47 = vmax.f32 %v2956_v31, %v2957_v46  ;;  %v2952_v6 = vrot.slane %v2951_v2, 1 }
 0x189   :  { %v2959_v51 = vrot.slane %v2958_v47, 2  ;;  %v2953_v55 = vmax.f32 %v2951_v2, %v2952_v6 }
 0x18b   :  { %v2960_v45 = vmax.f32 %v2958_v47, %v2959_v51  ;;  %v2970_v25 = vadd.f32 %v3038_v14, %v2953_v55 }
 0x18d   :  { %v2961_v52 = vrot.slane %v2960_v45, 1  ;;  %v2972_v9 = vmax.f32 %v2970_v25, 0.0 }
 0x18f   :  { %v2962_v10 = vmax.f32 %v2960_v45, %v2961_v52 }
 0x191   :  { %v2971_v28 = vadd.f32 %v3038_v14, %v2962_v10 }
 0x193   :  { %v2973_v1 = vmax.f32 %v2971_v28, 0.0 }
 0x195   :  { %v2976_v58 = vrot.slane %v2973_v1, 7 }
 0x197   :  { %v2978_v30 = vsel %vm2977_vm4, %v2976_v58, %v2972_v9 }
 0x198   :  { %2980 = vst [vmem:[#allocation5] sm:$0x3] %v2978_v30 }
 0x199   :  { %3354 = shalt.err (!%p3351_p12)
}
 0x19a   :  { %s3355_s15 = scalar_lea.hbm %s4319_s3, 32 }
 0x19b   :  { %p3356_p13 = scmp.ne.s32.totalorder %s4319_s3, %s3355_s15  ;;  %p3359_p0 = scmp.lt.u32.totalorder %s3355_s15, %s4319_s3 }
 0x19d   :  { %p3361_p1 = pnand %p3359_p0, %p3356_p13 }
 0x19f   :  { %3364 = shalt.err (!%p3361_p1)
}
 0x1a0   :  { %2990 = dma.vmem_to_hbm [thread:$0]  %s2988_s12, 32, %s4319_s3, [#allocation4]  }
 0x1a1   :  { %3367 = dma.done.wait [#allocation4], 32  }
 0x1a2   :  { %3368 = vsyncadd [#allocation4], 4294967264 }
 0x1a3   :  { %2994 = vsyncpa [#allocation3], 1 }
 0x1a4   :  { %2995 = vsyncpa [#allocation4], 1 }

</bundles_post_ra>
